<compile_context>
chip_gen: v6e
topology: v6e:2x2x1
jax: 0.10.0
libtpu: 0.0.40
codegen_flags: <defaults>
</compile_context>

<pallas_src>
import math

import jax
import jax.numpy as jnp
from jax.experimental import pallas as pl
from jax.experimental.pallas import tpu as pltpu

_LANE = 128


def _round_up(x, m):
    return ((x + m - 1) // m) * m


def _sublane_granule(dtype):
    # f32 -> 8 rows per sublane-tile, bf16 -> 16, int8/fp8 -> 32.
    itemsize = jnp.dtype(dtype).itemsize
    return 8 * max(1, 4 // itemsize)


def _td_linear_kernel(x_ref, w_ref, b_ref, o_ref):
    # x_ref: (TM, K), w_ref: (K, TN), b_ref: (1, TN) f32, o_ref: (TM, TN)
    acc = jnp.dot(x_ref[...], w_ref[...], preferred_element_type=jnp.float32)
    o_ref[...] = (acc + b_ref[...]).astype(o_ref.dtype)


def _plan_packing(f_in, f_out, itemsize, max_pack=16, max_packed_w_bytes=4 << 20):
    """Pick padded feature dims (fi_pad, fo_pad) and row-pack factor P such that
    P*fi_pad and P*fo_pad are multiples of the 128-lane width (lane-dense I/O)."""

    def pack_for(fi, fo):
        pi = _LANE // math.gcd(fi, _LANE)
        po = _LANE // math.gcd(fo, _LANE)
        return pi * po // math.gcd(pi, po)  # lcm

    fi8, fo8 = _round_up(f_in, 8), _round_up(f_out, 8)
    p = pack_for(fi8, fo8)
    if p == 1:
        return fi8, fo8, 1                       # already 128-lane dense
    if p <= max_pack and (p * fi8) * (p * fo8) * itemsize <= max_packed_w_bytes:
        return fi8, fo8, p                       # byte-neutral row packing
    # Wide features: block-diagonal weight would blow up; pad straight to the
    # 128-lane width instead (still lane-dense, small relative inflation).
    return _round_up(f_in, _LANE), _round_up(f_out, _LANE), 1


def _vmem_budget():
    """Generation-aware scoped-VMEM limit and the share usable for tiles."""
    cap = 64 * 1024 * 1024                       # v7x-safe default if query fails
    try:
        info = pltpu.get_tpu_info()
        cap = int(getattr(info, "vmem_capacity_bytes", cap)) or cap
    except Exception:
        pass
    limit = min(cap * 3 // 4, 100 * 1024 * 1024)  # v7x: 48 MiB, v5e/v6e: 96 MiB
    tiles = max(limit - 8 * 1024 * 1024, 8 * 1024 * 1024)  # headroom: internal scratch
    return limit, tiles


def _choose_tiles(m_rows, k, no, x_it, o_it, w_it, granule, budget):
    """Row tile TM and output-feature tile TN under the VMEM tile budget."""
    # Column tile: keep the full output width unless the (double-buffered)
    # resident weight block alone would eat more than half the budget.
    tn = no
    while tn > _LANE and 2 * k * tn * w_it > budget // 2:
        tn = _round_up(max(_LANE, tn // 2), _LANE)
    # TODO(synk): if even a (K, 128) weight block overflows the budget, a K
    # (reduction) grid axis with an f32 accumulator would be needed.
    row_budget = budget - 2 * k * tn * w_it - 2 * tn * 4
    bytes_per_row = 2 * (k * x_it + tn * o_it)    # double-buffered x and out tiles
    tm = max(granule, (max(row_budget, 0) // bytes_per_row) // granule * granule)
    tm = min(tm, 4096)                            # big tiles amortize ~0.35us/step
    if m_rows <= 2 * granule:
        tm = m_rows                               # trivial work: one full-extent block
    else:
        # Guarantee >= 2 row tiles so the "parallel" axis can feed both v7x cores.
        half = _round_up(-(-m_rows // 2), granule)
        tm = min(tm, half)
    return tm, tn


def time_distributed_3d(x, w, b, *, compute_dtype=None):
    """TimeDistributed3D with an inner Linear: (B, T, F_in) -> (B, T, F_out).

    Equivalent to the PyTorch module's view(B*T, F) -> td_net -> view(B, T, F_out)
    with td_net = nn.Linear (weight stored as (F_in, F_out), y = x @ w + b).

    If `compute_dtype` is given (e.g. jnp.bfloat16 on the inference path), x, w
    and the RETURNED output use that dtype (halving HBM bytes on this
    bandwidth-bound kernel); accumulation and the bias add stay in f32 inside
    the kernel.  With compute_dtype=None the input dtype is preserved, matching
    the PyTorch module.
    """
    B, T, F_in = x.shape
    kw_dim, F_out = w.shape
    assert kw_dim == F_in
    N = B * T

    if compute_dtype is not None:
        x = x.astype(compute_dtype)
        w = w.astype(compute_dtype)
    out_dtype = x.dtype
    x_it = jnp.dtype(out_dtype).itemsize
    w_it = jnp.dtype(w.dtype).itemsize
    granule = _sublane_granule(out_dtype)

    fi_pad, fo_pad, P = _plan_packing(F_in, F_out, w_it)

    # Free row-major collapse (like .view() in torch), then zero-pad features
    # and rows so the kernel always sees a 128-lane-dense layout.
    x2d = x.reshape(N, F_in)
    n_pad = _round_up(N, P * granule)
    x2d = jnp.pad(x2d, ((0, n_pad - N), (0, fi_pad - F_in)))
    w_p = jnp.pad(w, ((0, fi_pad - F_in), (0, fo_pad - F_out)))
    b_p = jnp.pad(b.astype(jnp.float32), (0, fo_pad - F_out)).reshape(1, fo_pad)

    if P > 1:
        # Fold P consecutive rows into one lane-dense row; the block-diagonal
        # weight keeps the single matmul exactly equivalent.
        x2d = x2d.reshape(n_pad // P, P * fi_pad)
        eye = jnp.eye(P, dtype=w_p.dtype)
        w_p = jnp.einsum("pq,io->piqo", eye, w_p).reshape(P * fi_pad, P * fo_pad)
        b_p = jnp.tile(b_p, (1, P))

    M, K = x2d.shape
    NO = w_p.shape[1]

    vmem_limit, tile_budget = _vmem_budget()
    TM, TN = _choose_tiles(M, K, NO, x_it, x_it, w_it, granule, tile_budget)
    grid = (pl.cdiv(M, TM), pl.cdiv(NO, TN))

    cost = pl.CostEstimate(
        flops=int(2 * M * K * NO),
        transcendentals=0,
        bytes_accessed=int(M * K * x_it + K * NO * w_it + NO * 4 + M * NO * x_it),
    )

    # Note: weight/bias use a constant block index so they stay VMEM-resident;
    # their (conservatively double-buffered) footprint is charged to the tile
    # budget above rather than forcing single-buffering via pipeline_mode.
    out2d = pl.pallas_call(
        _td_linear_kernel,
        out_shape=jax.ShapeDtypeStruct((M, NO), out_dtype),
        grid_spec=pl.GridSpec(
            grid=grid,
            in_specs=[
                pl.BlockSpec((TM, K), lambda i, j: (i, 0)),   # streamed row tiles
                pl.BlockSpec((K, TN), lambda i, j: (0, j)),   # weight column tiles
                pl.BlockSpec((1, TN), lambda i, j: (0, j)),   # bias column tiles
            ],
            out_specs=pl.BlockSpec((TM, TN), lambda i, j: (i, j)),
        ),
        compiler_params=pltpu.CompilerParams(
            dimension_semantics=("parallel", "parallel"),  # independent tiles
            vmem_limit_bytes=int(vmem_limit),
        ),
        cost_estimate=cost,
    )(x2d, w_p, b_p)

    # Un-pack rows, drop padding, restore (B, T, F_out).
    out = out2d.reshape(n_pad, fo_pad)[:N, :F_out]
    return out.reshape(B, T, F_out)


if __name__ == "__main__":
    key = jax.random.PRNGKey(0)
    kx, kw, kb = jax.random.split(key, 3)

    # Small shapes implied by the forward: (batch, timesteps, flat).
    B, T, F_in, F_out = 2, 8, 32, 32
    x = jax.random.normal(kx, (B, T, F_in), dtype=jnp.float32)
    w = jax.random.normal(kw, (F_in, F_out), dtype=jnp.float32) * 0.05
    b = jax.random.normal(kb, (F_out,), dtype=jnp.float32) * 0.05

    out = jax.block_until_ready(time_distributed_3d(x, w, b))
    ref = (x.reshape(B * T, F_in) @ w + b).reshape(B, T, F_out)
    assert out.shape == (B, T, F_out)
    assert jnp.allclose(out, ref, atol=1e-5, rtol=1e-5)

    # Larger case: exercises row tiling (grid >= 2) with F_in != F_out.
    B2, T2, Fi2, Fo2 = 4, 2048, 32, 64
    kx2, kw2, kb2 = jax.random.split(jax.random.PRNGKey(1), 3)
    x2 = jax.random.normal(kx2, (B2, T2, Fi2), dtype=jnp.float32)
    w2 = jax.random.normal(kw2, (Fi2, Fo2), dtype=jnp.float32) * 0.05
    b2 = jax.random.normal(kb2, (Fo2,), dtype=jnp.float32) * 0.05
    out2 = jax.block_until_ready(time_distributed_3d(x2, w2, b2))
    ref2 = (x2.reshape(B2 * T2, Fi2) @ w2 + b2).reshape(B2, T2, Fo2)
    assert jnp.allclose(out2, ref2, atol=1e-4, rtol=1e-4)

    # bf16 I/O (v6e/v7x MXU-friendly); f32 accumulation + bias add in-kernel.
    out_bf16 = jax.block_until_ready(
        time_distributed_3d(x2, w2, b2, compute_dtype=jnp.bfloat16))
    assert out_bf16.dtype == jnp.bfloat16
    assert jnp.allclose(out_bf16.astype(jnp.float32), ref2, atol=5e-2, rtol=5e-2)

    # Feature dims that previously hit the masked-store fallback (F=24):
    # now zero-padded + packed so the lane-dense path is always taken.
    B3, T3, F3 = 2, 8, 24
    kx3, kw3, kb3 = jax.random.split(jax.random.PRNGKey(2), 3)
    x3 = jax.random.normal(kx3, (B3, T3, F3), dtype=jnp.float32)
    w3 = jax.random.normal(kw3, (F3, F3), dtype=jnp.float32) * 0.05
    b3 = jax.random.normal(kb3, (F3,), dtype=jnp.float32) * 0.05
    out3 = jax.block_until_ready(time_distributed_3d(x3, w3, b3))
    ref3 = (x3.reshape(B3 * T3, F3) @ w3 + b3).reshape(B3, T3, F3)
    assert jnp.allclose(out3, ref3, atol=1e-4, rtol=1e-4)

    # TODO(synk): the module's td_net is arbitrary; only the Linear inner net is kernelized here.
    print("KERNEL_OK")
</pallas_src>

<mosaic_0001>
module attributes {stable_mosaic.version = 11 : i64} {
  func.func @_td_linear_kernel(%arg0: i32, %arg1: i32, %arg2: memref<8x128xf32, #tpu.memory_space<vmem>>, %arg3: memref<128x128xf32, #tpu.memory_space<vmem>>, %arg4: memref<1x128xf32, #tpu.memory_space<vmem>>, %arg5: memref<8x128xf32, #tpu.memory_space<vmem>>) attributes {dimension_semantics = [#tpu.dimension_semantics<parallel>, #tpu.dimension_semantics<parallel>], iteration_bounds = array<i64: 1, 1>, scalar_prefetch = 0 : i64, scratch_operands = 0 : i64, tpu.core_type = #tpu.core_type<tc>, window_params = [{transform_indices = @transform_0, window_bounds = array<i64: 8, 128>}, {transform_indices = @transform_1, window_bounds = array<i64: 128, 128>}, {transform_indices = @transform_2, window_bounds = array<i64: 1, 128>}, {transform_indices = @transform_3, window_bounds = array<i64: 8, 128>}]} {
    %c0 = arith.constant 0 : index
    %c0_0 = arith.constant 0 : index
    %0 = vector.load %arg2[%c0, %c0_0] : memref<8x128xf32, #tpu.memory_space<vmem>>, vector<8x128xf32>
    %c0_1 = arith.constant 0 : index
    %c0_2 = arith.constant 0 : index
    %1 = vector.load %arg3[%c0_1, %c0_2] : memref<128x128xf32, #tpu.memory_space<vmem>>, vector<128x128xf32>
    %cst = arith.constant dense<0.000000e+00> : vector<8x128xf32>
    %2 = tpu.matmul %0, %1, %cst {dimension_numbers = #tpu.dot_dimension_numbers<[1], [0], [0], [1], [0, 0, 1, 1], [], []>} : vector<8x128xf32>, vector<128x128xf32>, vector<8x128xf32> -> vector<8x128xf32>
    %c0_3 = arith.constant 0 : index
    %c0_4 = arith.constant 0 : index
    %3 = vector.load %arg4[%c0_3, %c0_4] : memref<1x128xf32, #tpu.memory_space<vmem>>, vector<1x128xf32>
    %4 = vector.broadcast %3 : vector<1x128xf32> to vector<8x128xf32>
    %5 = arith.addf %2, %4 : vector<8x128xf32>
    %c0_5 = arith.constant 0 : index
    %c0_6 = arith.constant 0 : index
    %6 = vector.load %arg5[%c0_5, %c0_6] : memref<8x128xf32, #tpu.memory_space<vmem>>, vector<8x128xf32>
    tpu.vector_store %arg5[%c0_5, %c0_6], %5 {strides = array<i32>} : memref<8x128xf32, #tpu.memory_space<vmem>>, vector<8x128xf32>,
    return
  }
  func.func @transform_0(%arg0: i32, %arg1: i32) -> (i32, i32) {
    %c0_i32 = arith.constant 0 : i32
    %c0_i32_0 = arith.constant 0 : i32
    return %arg0, %c0_i32 : i32, i32
  }
  func.func @transform_1(%arg0: i32, %arg1: i32) -> (i32, i32) {
    %c0_i32 = arith.constant 0 : i32
    %c0_i32_0 = arith.constant 0 : i32
    return %c0_i32, %arg1 : i32, i32
  }
  func.func @transform_2(%arg0: i32, %arg1: i32) -> (i32, i32) {
    %c0_i32 = arith.constant 0 : i32
    %c0_i32_0 = arith.constant 0 : i32
    return %c0_i32, %arg1 : i32, i32
  }
  func.func @transform_3(%arg0: i32, %arg1: i32) -> (i32, i32) {
    %c0_i32 = arith.constant 0 : i32
    return %arg0, %arg1 : i32, i32
  }
}

</mosaic_0001>

<bundles_post_ra>
// kernel: tpu_custom_call.1
= control target key start
LH: loop header
LB: loop body
LE: loop exit
PB: predicated region body
PF: predicated region fallthrough
CT: control target
= control target key end

     0   :  { %8 = vsyncpa [#allocation3], 0  ;;  %s317_s0 = inlined_call_operand.hbm [shape: f32[8,128], index: 0, kind: input, shape index: {}]   ;;  %s318_s1 = inlined_call_operand.hbm [shape: f32[128,128], index: 1, kind: input, shape index: {}]   ;;  %s319_s2 = inlined_call_operand.vmem [shape: f32[1,128], index: 2, kind: input, shape index: {}]   ;;  %s320_s3 = inlined_call_operand.hbm [shape: f32[8,128], index: 3, kind: output, shape index: {}]  }
   0x1   :  { %9 = vsyncpa [#allocation6], 0 }
   0x2   :  { %10 = vsyncpa [#allocation4], 0  ;;  %s278_s12 = smov [#allocation2]   ;;  %s279_s14 = smov [#allocation5]  }
   0x3   :  { %s17_s13 = sshll.u32 %s278_s12, 4  ;;  %s26_s15 = sshll.u32 %s279_s14, 4  ;;  %s18_s13 = int_to_ptr.vmem [resolvable:$true] %s17_s13  ;;  %s27_s15 = int_to_ptr.vmem [resolvable:$true] %s26_s15 }
   0x4   :  { %s220_s16 = scalar_lea.vmem %s18_s13, 128  ;;  %p225_p1 = scmp.lt.s32.totalorder %s18_s13, %s18_s13 }
   0x5   :  { %p221_p0 = scmp.ne.s32.totalorder %s18_s13, %s220_s16  ;;  %p226_p2 = scmp.lt.s32.totalorder %s220_s16, %s220_s16 }
   0x7   :  { %p227_p3 = por %p226_p2, %p225_p1 }
   0x9   :  { %p228_p4 = pnand %p227_p3, %p221_p0 }
   0xb   :  { %231 = shalt.err (!%p228_p4)
}
   0xc   :  { %20 = dma.hbm_to_vmem [thread:$0]  %s317_s0, 128, %s18_s13, [#allocation3]  }
   0xd   :  { %s240_s19 = scalar_lea.vmem %s27_s15, 2048  ;;  %p245_p6 = scmp.lt.s32.totalorder %s27_s15, %s27_s15 }
   0xe   :  { %p241_p5 = scmp.ne.s32.totalorder %s27_s15, %s240_s19  ;;  %p246_p7 = scmp.lt.s32.totalorder %s240_s19, %s240_s19 }
  0x10   :  { %p247_p8 = por %p246_p7, %p245_p6 }
  0x12   :  { %p248_p9 = pnand %p247_p8, %p241_p5 }
  0x14   :  { %251 = shalt.err (!%p248_p9)
}
  0x15   :  { %s280_s20 = smov 128   ;;  %s281_s21 = smov 8  }
  0x16   :  { %32 = dma.hbm_to_vmem [thread:$0]  %s318_s1, 2048, %s27_s15, [#allocation6], %s280_s20, %s280_s20, %s281_s21  }
  0x17   :  { %272 = dma.done.wait [#allocation3], 128  }
  0x18   :  { %273 = vsyncadd [#allocation3], 4294967168 }
  0x19   :  { %274 = dma.done.wait [#allocation6], 2048  }
  0x1a   :  { %275 = vsyncadd [#allocation6], 4294965248  ;;  %v282_v0 = vmov 0.0   ;;  %vm283_vm0 = vmmov 0   ;;  %v57_v1 = vld [vmem:[#allocation5 + $0x78] sm:$0xff]  ;;  %v56_v2 = vld [vmem:[#allocation5 + $0x70] sm:$0xff] }
  0x1b   :  { %170 = vmatprep.subr.mxu0 %v282_v0  ;;  %202 = vmatprep.mubr.msk.f32.mxu0 %vm283_vm0, %v282_v0  ;;  %v55_v3 = vld [vmem:[#allocation5 + $0x68] sm:$0xff]  ;;  %v54_v4 = vld [vmem:[#allocation5 + $0x60] sm:$0xff]  ;;  %v53_v5 = vld [vmem:[#allocation5 + $0x58] sm:$0xff]  ;;  %s284_s24 = smov [#allocation7]  }
  0x1c   :  { %171 = vmatpush3.msra.mxu0 %v57_v1  ;;  %v52_v6 = vld [vmem:[#allocation5 + $0x50] sm:$0xff]  ;;  %v51_v7 = vld [vmem:[#allocation5 + $0x48] sm:$0xff]  ;;  %v50_v8 = vld [vmem:[#allocation5 + $0x40] sm:$0xff]  ;;  %s142_s25 = sshll.u32 %s284_s24, 4  ;;  %s143_s25 = int_to_ptr.vmem [resolvable:$true] %s142_s25 }
  0x1d   :  { %172 = vmatprep.subr.mxu0 %v282_v0  ;;  %v49_v9 = vld [vmem:[#allocation5 + $0x38] sm:$0xff]  ;;  %v48_v10 = vld [vmem:[#allocation5 + $0x30] sm:$0xff]  ;;  %v47_v11 = vld [vmem:[#allocation5 + $0x28] sm:$0xff]  ;;  %s252_s26 = scalar_lea.vmem %s143_s25, 128  ;;  %p257_p11 = scmp.lt.s32.totalorder %s143_s25, %s143_s25 }
  0x1e   :  { %173 = vmatpush3.msra.mxu0 %v56_v2  ;;  %v46_v12 = vld [vmem:[#allocation5 + $0x20] sm:$0xff]  ;;  %v45_v13 = vld [vmem:[#allocation5 + $0x18] sm:$0xff]  ;;  %v44_v14 = vld [vmem:[#allocation5 + $0x10] sm:$0xff]  ;;  %p253_p10 = scmp.ne.s32.totalorder %s143_s25, %s252_s26  ;;  %p258_p12 = scmp.lt.s32.totalorder %s252_s26, %s252_s26 }
  0x1f   :  { %174 = vmatprep.subr.mxu0 %v282_v0  ;;  %v43_v15 = vld [vmem:[#allocation5 + $0x8] sm:$0xff]  ;;  %v42_v16 = vld [vmem:[#allocation5] sm:$0xff]  ;;  %v41_v17 = vld [vmem:[#allocation2] sm:$0xff] }
  0x20   :  { %175 = vmatpush3.msra.mxu0 %v55_v3  ;;  %v152_v18 = vld [vmem:[%s319_s2] ss:$0 sm:$0xff]  ;;  %p259_p13 = por %p258_p12, %p257_p11 }
  0x21   :  { %176 = vmatprep.subr.mxu0 %v282_v0 }
  0x22   :  { %177 = vmatpush3.msra.mxu0 %v54_v4  ;;  %p260_p0 = pnand %p259_p13, %p253_p10 }
  0x23   :  { %178 = vmatprep.subr.mxu0 %v282_v0 }
  0x24   :  { %179 = vmatpush3.msra.mxu0 %v53_v5 }
  0x25   :  { %180 = vmatprep.subr.mxu0 %v282_v0 }
  0x26   :  { %181 = vmatpush3.msra.mxu0 %v52_v6 }
  0x27   :  { %182 = vmatprep.subr.mxu0 %v282_v0 }
  0x28   :  { %183 = vmatpush3.msra.mxu0 %v51_v7 }
  0x29   :  { %184 = vmatprep.subr.mxu0 %v282_v0 }
  0x2a   :  { %185 = vmatpush3.msra.mxu0 %v50_v8 }
  0x2b   :  { %186 = vmatprep.subr.mxu0 %v282_v0 }
  0x2c   :  { %187 = vmatpush3.msra.mxu0 %v49_v9 }
  0x2d   :  { %188 = vmatprep.subr.mxu0 %v282_v0 }
  0x2e   :  { %189 = vmatpush3.msra.mxu0 %v48_v10 }
  0x2f   :  { %190 = vmatprep.subr.mxu0 %v282_v0 }
  0x30   :  { %191 = vmatpush3.msra.mxu0 %v47_v11 }
  0x31   :  { %192 = vmatprep.subr.mxu0 %v282_v0 }
  0x32   :  { %193 = vmatpush3.msra.mxu0 %v46_v12 }
  0x33   :  { %194 = vmatprep.subr.mxu0 %v282_v0 }
  0x34   :  { %195 = vmatpush3.msra.mxu0 %v45_v13 }
  0x35   :  { %196 = vmatprep.subr.mxu0 %v282_v0 }
  0x36   :  { %197 = vmatpush3.msra.mxu0 %v44_v14 }
  0x37   :  { %198 = vmatprep.subr.mxu0 %v282_v0 }
  0x38   :  { %199 = vmatpush3.msra.mxu0 %v43_v15 }
  0x39   :  { %200 = vmatprep.subr.mxu0 %v282_v0 }
  0x3a   :  { %201 = vmatpush3.msra.mxu0 %v42_v16 }
  0x3b   :  { %203 = vmatmul.mubr.f32.vlgmr.msra.gmra.mxu0 %v41_v17 }
  0xfb   :  { %v131_v19 = vpop.f32.mrf.mxu0 }
  0xfc   :  { %v132_v20 = vadd.f32 %v152_v18, %v131_v19 }
  0xfd   :  { %v204_v21 = vpop.f32.mrf.mxu0 }
  0xfe   :  { %135 = vst [vmem:[#allocation7] sm:$0xff] %v132_v20 }
  0xff   :  { %263 = shalt.err (!%p260_p0)
}
 0x100   :  { %145 = dma.vmem_to_hbm [thread:$0]  %s143_s25, 128, %s320_s3, [#allocation4]  }
 0x101   :  { %276 = dma.done.wait [#allocation4], 128  }
 0x102   :  { %277 = vsyncadd [#allocation4], 4294967168 }
 0x103   :  { %149 = vsyncpa [#allocation3], 1 }
 0x104   :  { %150 = vsyncpa [#allocation6], 1 }
 0x105   :  { %151 = vsyncpa [#allocation4], 1 }

</bundles_post_ra>
